<compile_context>
chip_gen: v5e
topology: v5e:2x2
jax: 0.10.0
libtpu: 0.0.40
codegen_flags: <defaults>
</compile_context>

<pallas_src>
import functools

import jax
import jax.numpy as jnp
from jax.experimental import pallas as pl
from jax.experimental.pallas import tpu as pltpu


# -----------------------------------------------------------------------------
# Model configuration (small synthetic hetero graph)
# -----------------------------------------------------------------------------
NODE_TYPES = ("users", "items")
EDGE_TYPES = (("users", "to", "items"), ("items", "rev_to", "users"))
U2I = ("users", "to", "items")
I2U = ("items", "rev_to", "users")
NUM_NODES = {"users": 16, "items": 24}
FEAT_DIMS = {"users": 16, "items": 24}     # raw (pre-encoder) tabular feature dims
CHANNELS = 32
OUT_CHANNELS = 8
NUM_LAYERS = 2                              # fused kernel below is specialized to 2
NUM_SEEDS = 4
SHALLOW_LIST = ("items",)
ENTITY_TABLE = "users"
SECONDS_PER_DAY = 60.0 * 60.0 * 24.0


# -----------------------------------------------------------------------------
# Fully fused forward kernel: encoder + temporal + shallow + 2x SAGE + head
# -----------------------------------------------------------------------------
def _fused_gnn_kernel(
    # node data
    feat_u_ref, feat_i_ref, pe_u_ref, pe_i_ref, shallow_i_ref,
    # normalized dense adjacencies (dst, src)
    adj_u2i_ref, adj_i2u_ref,
    # encoder linears
    enc_u_w_ref, enc_u_b_ref, enc_i_w_ref, enc_i_b_ref,
    # temporal linears
    tmp_u_w_ref, tmp_u_b_ref, tmp_i_w_ref, tmp_i_b_ref,
    # GNN layer 1 (both destinations) : fused [W_l; W_r] weights + bias + LN
    g1_u2i_w_ref, g1_u2i_b_ref, g1_i2u_w_ref, g1_i2u_b_ref,
    ln1_u_g_ref, ln1_u_b_ref, ln1_i_g_ref, ln1_i_b_ref,
    # GNN layer 2 (only 'users' destination is live for the head)
    g2_i2u_w_ref, g2_i2u_b_ref, ln2_u_g_ref, ln2_u_b_ref,
    # head
    head_w_ref, head_b_ref,
    # output
    out_ref,
):
    bf16 = jnp.bfloat16
    f32 = jnp.float32
    C = CHANNELS

    def mm(a, b):
        # bf16 MXU matmul with f32 accumulation.
        return jnp.dot(a.astype(bf16), b.astype(bf16), preferred_element_type=f32)

    def ln_relu(x, g_ref, b_ref):
        # LayerNorm (biased variance, eps=1e-5) over channels, then ReLU. f32.
        mu = jnp.mean(x, axis=-1, keepdims=True)
        var = jnp.mean((x - mu) ** 2, axis=-1, keepdims=True)
        y = (x - mu) * jax.lax.rsqrt(var + 1e-5)
        return jnp.maximum(y * g_ref[...] + b_ref[...], 0.0)

    def sage(adj, x_src, x_dst, w_lr_ref, b_ref):
        # SAGEConv (mean aggr; adj is row-normalized):
        #   concat(A @ x_src, x_dst) @ [W_l ; W_r] + b_l   -- one K=2C matmul.
        agg = mm(adj, x_src)                                 # (n_dst, C) f32
        h = jnp.concatenate([agg, x_dst], axis=-1)           # (n_dst, 2C) f32
        return mm(h, w_lr_ref[...]) + b_ref[...]

    # ---- 1) encoder + temporal residual + shallow embedding (VMEM resident) ----
    x_u = mm(feat_u_ref[...], enc_u_w_ref[...]) + enc_u_b_ref[...]
    x_i = mm(feat_i_ref[...], enc_i_w_ref[...]) + enc_i_b_ref[...]

    x_u = x_u + mm(pe_u_ref[...], tmp_u_w_ref[...]) + tmp_u_b_ref[...]
    x_i = x_i + mm(pe_i_ref[...], tmp_i_w_ref[...]) + tmp_i_b_ref[...]

    x_i = x_i + shallow_i_ref[...]

    # ---- 2) GNN layer 1: both destinations, from the pre-layer x_dict ----
    adj_i2u = adj_i2u_ref[...]            # (n_users, n_items)
    adj_u2i = adj_u2i_ref[...]            # (n_items, n_users)
    u1 = ln_relu(sage(adj_i2u, x_i, x_u, g1_i2u_w_ref, g1_i2u_b_ref),
                 ln1_u_g_ref, ln1_u_b_ref)
    i1 = ln_relu(sage(adj_u2i, x_u, x_i, g1_u2i_w_ref, g1_u2i_b_ref),
                 ln1_i_g_ref, ln1_i_b_ref)

    # ---- 3) GNN layer 2: only the entity-table seed rows feed the head, so the
    #         items-destination conv / LN are dead work and the users conv is
    #         restricted to the first NUM_SEEDS destination rows. ----
    u2 = ln_relu(
        sage(adj_i2u[0:NUM_SEEDS, :], i1, u1[0:NUM_SEEDS, :],
             g2_i2u_w_ref, g2_i2u_b_ref),
        ln2_u_g_ref, ln2_u_b_ref)

    # ---- 4) head: MLP(channels, out_channels, num_layers=1) == single Linear ----
    out_ref[...] = mm(u2, head_w_ref[...]) + head_b_ref[...]


def _full_spec(shape):
    return pl.BlockSpec(shape, lambda i: (0,) * len(shape))


def fused_forward_call(kernel_inputs):
    in_specs = [_full_spec(tuple(a.shape)) for a in kernel_inputs]
    return pl.pallas_call(
        _fused_gnn_kernel,
        out_shape=jax.ShapeDtypeStruct((NUM_SEEDS, OUT_CHANNELS), jnp.float32),
        grid=(1,),
        in_specs=in_specs,
        out_specs=_full_spec((NUM_SEEDS, OUT_CHANNELS)),
        compiler_params=pltpu.CompilerParams(
            dimension_semantics=("arbitrary",)),
    )(*kernel_inputs)


# -----------------------------------------------------------------------------
# Parameter init (deterministic, in-script); kept in f32, cast to bf16 at call.
# -----------------------------------------------------------------------------
def init_params(key):
    params = {"enc": {}, "temporal": {}, "shallow": {}, "gnn": [], "ln": [], "head": {}}

    def nrm(k, shape, std=0.1):
        return std * jax.random.normal(k, shape, dtype=jnp.float32)

    keys = iter(jax.random.split(key, 128))

    # HeteroEncoder (simplified: one linear projection per node type)
    # TODO(synk): full torch_frame column-wise encoders are approximated by a single Linear.
    for nt in NODE_TYPES:
        params["enc"][nt] = {
            "w": nrm(next(keys), (FEAT_DIMS[nt], CHANNELS)),
            "b": jnp.zeros((1, CHANNELS), jnp.float32),
        }

    # HeteroTemporalEncoder: positional encoding (prologue) + Linear(channels, channels)
    for nt in NODE_TYPES:
        params["temporal"][nt] = {
            "w": nrm(next(keys), (CHANNELS, CHANNELS)),
            "b": jnp.zeros((1, CHANNELS), jnp.float32),
        }

    # Shallow embeddings (std=0.1 normal, as in reset_parameters)
    for nt in SHALLOW_LIST:
        params["shallow"][nt] = nrm(next(keys), (NUM_NODES[nt], CHANNELS))

    # HeteroGraphSAGE: per layer, per edge type SAGEConv (W_l, b_l, W_r); per node type LN
    for _ in range(NUM_LAYERS):
        layer = {}
        for et in EDGE_TYPES:
            layer[et] = {
                "w_l": nrm(next(keys), (CHANNELS, CHANNELS)),
                "b_l": jnp.zeros((1, CHANNELS), jnp.float32),
                "w_r": nrm(next(keys), (CHANNELS, CHANNELS)),
            }
        params["gnn"].append(layer)
        ln = {
            nt: {
                "gamma": jnp.ones((1, CHANNELS), jnp.float32),
                "beta": jnp.zeros((1, CHANNELS), jnp.float32),
            }
            for nt in NODE_TYPES
        }
        params["ln"].append(ln)

    # Head: MLP(channels, out_channels, num_layers=1) == single Linear
    params["head"] = {
        "w": nrm(next(keys), (CHANNELS, OUT_CHANNELS)),
        "b": jnp.zeros((1, OUT_CHANNELS), jnp.float32),
    }
    return params


# -----------------------------------------------------------------------------
# Dense normalized adjacency (mean aggregation operator)
# -----------------------------------------------------------------------------
def build_norm_adj(edge_index, n_src, n_dst):
    # A_norm[d, s] = 1/deg(d) if edge s->d exists.
    src, dst = edge_index
    adj = jnp.zeros((n_dst, n_src), jnp.float32).at[dst, src].add(1.0)
    deg = jnp.sum(adj, axis=1, keepdims=True)
    return adj / jnp.maximum(deg, 1.0)


# -----------------------------------------------------------------------------
# Forward pass (mirrors Model.forward); one fused pallas_call.
# -----------------------------------------------------------------------------
@jax.jit
def model_forward(params, feat_dict, time_dict, batch_dict, n_id_dict,
                  seed_time, adj_dict):
    bf16 = jnp.bfloat16
    C = CHANNELS
    half = C // 2

    # ---- tiny XLA prologue (runs once before the single kernel launch) ----
    # Temporal positional encoding: rel_time (days) -> [sin | cos] features.
    # TODO(synk): sin/cos PE kept in the XLA prologue instead of in-kernel EUP.
    inv_freq = 1.0 / jnp.power(
        10000.0, 2.0 * jnp.arange(half, dtype=jnp.float32) / C)

    def pos_enc(nt):
        rel_t = (seed_time[batch_dict[nt]] - time_dict[nt]) / SECONDS_PER_DAY
        ang = rel_t[:, None] * inv_freq[None, :]
        return jnp.concatenate([jnp.sin(ang), jnp.cos(ang)], axis=-1).astype(bf16)

    pe = {nt: pos_enc(nt) for nt in NODE_TYPES}

    # Shallow embedding gather (embedding(n_id)); stays f32 (residual add).
    shallow_items = jnp.take(params["shallow"]["items"], n_id_dict["items"], axis=0)

    def b16(x):
        return x.astype(bf16)

    def w_lr(layer, et):
        # Fused [W_l ; W_r] so each SAGE projection is a single K=2C matmul.
        return b16(jnp.concatenate(
            [params["gnn"][layer][et]["w_l"], params["gnn"][layer][et]["w_r"]],
            axis=0))

    kernel_inputs = [
        # node data
        b16(feat_dict["users"]), b16(feat_dict["items"]),
        pe["users"], pe["items"],
        shallow_items,
        # adjacencies (bf16 MXU operands; values are 1/deg, safe in bf16)
        b16(adj_dict[U2I]), b16(adj_dict[I2U]),
        # encoder
        b16(params["enc"]["users"]["w"]), params["enc"]["users"]["b"],
        b16(params["enc"]["items"]["w"]), params["enc"]["items"]["b"],
        # temporal
        b16(params["temporal"]["users"]["w"]), params["temporal"]["users"]["b"],
        b16(params["temporal"]["items"]["w"]), params["temporal"]["items"]["b"],
        # GNN layer 1
        w_lr(0, U2I), params["gnn"][0][U2I]["b_l"],
        w_lr(0, I2U), params["gnn"][0][I2U]["b_l"],
        params["ln"][0]["users"]["gamma"], params["ln"][0]["users"]["beta"],
        params["ln"][0]["items"]["gamma"], params["ln"][0]["items"]["beta"],
        # GNN layer 2 (only users destination needed for the head)
        w_lr(1, I2U), params["gnn"][1][I2U]["b_l"],
        params["ln"][1]["users"]["gamma"], params["ln"][1]["users"]["beta"],
        # head
        b16(params["head"]["w"]), params["head"]["b"],
    ]
    return fused_forward_call(kernel_inputs)


# -----------------------------------------------------------------------------
# Main
# -----------------------------------------------------------------------------
if __name__ == "__main__":
    key = jax.random.PRNGKey(0)
    (k_param, k_feat_u, k_feat_i, k_time_u, k_time_i, k_batch_u, k_batch_i,
     k_e0, k_e1, k_seed) = jax.random.split(key, 10)

    params = init_params(k_param)

    feat_dict = {
        "users": jax.random.normal(k_feat_u, (NUM_NODES["users"], FEAT_DIMS["users"]), jnp.float32),
        "items": jax.random.normal(k_feat_i, (NUM_NODES["items"], FEAT_DIMS["items"]), jnp.float32),
    }
    time_dict = {
        "users": jax.random.uniform(k_time_u, (NUM_NODES["users"],), jnp.float32, 0.0, 30.0 * SECONDS_PER_DAY),
        "items": jax.random.uniform(k_time_i, (NUM_NODES["items"],), jnp.float32, 0.0, 30.0 * SECONDS_PER_DAY),
    }
    batch_dict = {
        "users": jax.random.randint(k_batch_u, (NUM_NODES["users"],), 0, NUM_SEEDS),
        "items": jax.random.randint(k_batch_i, (NUM_NODES["items"],), 0, NUM_SEEDS),
    }
    n_id_dict = {nt: jnp.arange(NUM_NODES[nt], dtype=jnp.int32) for nt in NODE_TYPES}
    seed_time = jax.random.uniform(k_seed, (NUM_SEEDS,), jnp.float32,
                                   30.0 * SECONDS_PER_DAY, 60.0 * SECONDS_PER_DAY)

    num_edges = 40
    ei_u2i = jnp.stack([
        jax.random.randint(k_e0, (num_edges,), 0, NUM_NODES["users"]),
        jax.random.randint(jax.random.fold_in(k_e0, 1), (num_edges,), 0, NUM_NODES["items"]),
    ])
    ei_i2u = jnp.stack([ei_u2i[1], ei_u2i[0]])  # reverse edges

    adj_dict = {
        U2I: build_norm_adj(ei_u2i, NUM_NODES["users"], NUM_NODES["items"]),
        I2U: build_norm_adj(ei_i2u, NUM_NODES["items"], NUM_NODES["users"]),
    }

    out = model_forward(params, feat_dict, time_dict, batch_dict, n_id_dict,
                        seed_time, adj_dict)
    out = jax.block_until_ready(out)

    assert out.shape == (NUM_SEEDS, OUT_CHANNELS), out.shape
    assert jnp.all(jnp.isfinite(out))
    print("KERNEL_OK")
</pallas_src>

<mosaic_0001>
module attributes {stable_mosaic.version = 11 : i64} {
  func.func @_fused_gnn_kernel(%arg0: i32, %arg1: memref<16x16xbf16, #tpu.memory_space<vmem>>, %arg2: memref<24x24xbf16, #tpu.memory_space<vmem>>, %arg3: memref<16x32xbf16, #tpu.memory_space<vmem>>, %arg4: memref<24x32xbf16, #tpu.memory_space<vmem>>, %arg5: memref<24x32xf32, #tpu.memory_space<vmem>>, %arg6: memref<24x16xbf16, #tpu.memory_space<vmem>>, %arg7: memref<16x24xbf16, #tpu.memory_space<vmem>>, %arg8: memref<16x32xbf16, #tpu.memory_space<vmem>>, %arg9: memref<1x32xf32, #tpu.memory_space<vmem>>, %arg10: memref<24x32xbf16, #tpu.memory_space<vmem>>, %arg11: memref<1x32xf32, #tpu.memory_space<vmem>>, %arg12: memref<32x32xbf16, #tpu.memory_space<vmem>>, %arg13: memref<1x32xf32, #tpu.memory_space<vmem>>, %arg14: memref<32x32xbf16, #tpu.memory_space<vmem>>, %arg15: memref<1x32xf32, #tpu.memory_space<vmem>>, %arg16: memref<64x32xbf16, #tpu.memory_space<vmem>>, %arg17: memref<1x32xf32, #tpu.memory_space<vmem>>, %arg18: memref<64x32xbf16, #tpu.memory_space<vmem>>, %arg19: memref<1x32xf32, #tpu.memory_space<vmem>>, %arg20: memref<1x32xf32, #tpu.memory_space<vmem>>, %arg21: memref<1x32xf32, #tpu.memory_space<vmem>>, %arg22: memref<1x32xf32, #tpu.memory_space<vmem>>, %arg23: memref<1x32xf32, #tpu.memory_space<vmem>>, %arg24: memref<64x32xbf16, #tpu.memory_space<vmem>>, %arg25: memref<1x32xf32, #tpu.memory_space<vmem>>, %arg26: memref<1x32xf32, #tpu.memory_space<vmem>>, %arg27: memref<1x32xf32, #tpu.memory_space<vmem>>, %arg28: memref<32x8xbf16, #tpu.memory_space<vmem>>, %arg29: memref<1x8xf32, #tpu.memory_space<vmem>>, %arg30: memref<4x8xf32, #tpu.memory_space<vmem>>) attributes {dimension_semantics = [#tpu.dimension_semantics<arbitrary>], iteration_bounds = array<i64: 1>, scalar_prefetch = 0 : i64, scratch_operands = 0 : i64, tpu.core_type = #tpu.core_type<tc>, window_params = [{pipeline_mode = #tpu.pipeline_mode<synchronous>, transform_indices = @transform_0, window_bounds = array<i64: 16, 16>}, {pipeline_mode = #tpu.pipeline_mode<synchronous>, transform_indices = @transform_1, window_bounds = array<i64: 24, 24>}, {pipeline_mode = #tpu.pipeline_mode<synchronous>, transform_indices = @transform_2, window_bounds = array<i64: 16, 32>}, {pipeline_mode = #tpu.pipeline_mode<synchronous>, transform_indices = @transform_3, window_bounds = array<i64: 24, 32>}, {pipeline_mode = #tpu.pipeline_mode<synchronous>, transform_indices = @transform_4, window_bounds = array<i64: 24, 32>}, {pipeline_mode = #tpu.pipeline_mode<synchronous>, transform_indices = @transform_5, window_bounds = array<i64: 24, 16>}, {pipeline_mode = #tpu.pipeline_mode<synchronous>, transform_indices = @transform_6, window_bounds = array<i64: 16, 24>}, {pipeline_mode = #tpu.pipeline_mode<synchronous>, transform_indices = @transform_7, window_bounds = array<i64: 16, 32>}, {pipeline_mode = #tpu.pipeline_mode<synchronous>, transform_indices = @transform_8, window_bounds = array<i64: 1, 32>}, {pipeline_mode = #tpu.pipeline_mode<synchronous>, transform_indices = @transform_9, window_bounds = array<i64: 24, 32>}, {pipeline_mode = #tpu.pipeline_mode<synchronous>, transform_indices = @transform_10, window_bounds = array<i64: 1, 32>}, {pipeline_mode = #tpu.pipeline_mode<synchronous>, transform_indices = @transform_11, window_bounds = array<i64: 32, 32>}, {pipeline_mode = #tpu.pipeline_mode<synchronous>, transform_indices = @transform_12, window_bounds = array<i64: 1, 32>}, {pipeline_mode = #tpu.pipeline_mode<synchronous>, transform_indices = @transform_13, window_bounds = array<i64: 32, 32>}, {pipeline_mode = #tpu.pipeline_mode<synchronous>, transform_indices = @transform_14, window_bounds = array<i64: 1, 32>}, {pipeline_mode = #tpu.pipeline_mode<synchronous>, transform_indices = @transform_15, window_bounds = array<i64: 64, 32>}, {pipeline_mode = #tpu.pipeline_mode<synchronous>, transform_indices = @transform_16, window_bounds = array<i64: 1, 32>}, {pipeline_mode = #tpu.pipeline_mode<synchronous>, transform_indices = @transform_17, window_bounds = array<i64: 64, 32>}, {pipeline_mode = #tpu.pipeline_mode<synchronous>, transform_indices = @transform_18, window_bounds = array<i64: 1, 32>}, {pipeline_mode = #tpu.pipeline_mode<synchronous>, transform_indices = @transform_19, window_bounds = array<i64: 1, 32>}, {pipeline_mode = #tpu.pipeline_mode<synchronous>, transform_indices = @transform_20, window_bounds = array<i64: 1, 32>}, {pipeline_mode = #tpu.pipeline_mode<synchronous>, transform_indices = @transform_21, window_bounds = array<i64: 1, 32>}, {pipeline_mode = #tpu.pipeline_mode<synchronous>, transform_indices = @transform_22, window_bounds = array<i64: 1, 32>}, {pipeline_mode = #tpu.pipeline_mode<synchronous>, transform_indices = @transform_23, window_bounds = array<i64: 64, 32>}, {pipeline_mode = #tpu.pipeline_mode<synchronous>, transform_indices = @transform_24, window_bounds = array<i64: 1, 32>}, {pipeline_mode = #tpu.pipeline_mode<synchronous>, transform_indices = @transform_25, window_bounds = array<i64: 1, 32>}, {pipeline_mode = #tpu.pipeline_mode<synchronous>, transform_indices = @transform_26, window_bounds = array<i64: 1, 32>}, {pipeline_mode = #tpu.pipeline_mode<synchronous>, transform_indices = @transform_27, window_bounds = array<i64: 32, 8>}, {pipeline_mode = #tpu.pipeline_mode<synchronous>, transform_indices = @transform_28, window_bounds = array<i64: 1, 8>}, {pipeline_mode = #tpu.pipeline_mode<synchronous>, transform_indices = @transform_29, window_bounds = array<i64: 4, 8>}]} {
    %c0 = arith.constant 0 : index
    %c0_0 = arith.constant 0 : index
    %0 = vector.load %arg1[%c0, %c0_0] : memref<16x16xbf16, #tpu.memory_space<vmem>>, vector<16x16xbf16>
    %c0_1 = arith.constant 0 : index
    %c0_2 = arith.constant 0 : index
    %1 = vector.load %arg8[%c0_1, %c0_2] : memref<16x32xbf16, #tpu.memory_space<vmem>>, vector<16x32xbf16>
    %cst = arith.constant dense<0.000000e+00> : vector<16x32xf32>
    %2 = tpu.matmul %0, %1, %cst {dimension_numbers = #tpu.dot_dimension_numbers<[1], [0], [0], [1], [0, 0, 1, 1], [], []>} : vector<16x16xbf16>, vector<16x32xbf16>, vector<16x32xf32> -> vector<16x32xf32>
    %c0_3 = arith.constant 0 : index
    %c0_4 = arith.constant 0 : index
    %3 = vector.load %arg9[%c0_3, %c0_4] : memref<1x32xf32, #tpu.memory_space<vmem>>, vector<1x32xf32>
    %4 = vector.broadcast %3 : vector<1x32xf32> to vector<16x32xf32>
    %5 = arith.addf %2, %4 : vector<16x32xf32>
    %c0_5 = arith.constant 0 : index
    %c0_6 = arith.constant 0 : index
    %6 = vector.load %arg2[%c0_5, %c0_6] : memref<24x24xbf16, #tpu.memory_space<vmem>>, vector<24x24xbf16>
    %c0_7 = arith.constant 0 : index
    %c0_8 = arith.constant 0 : index
    %7 = vector.load %arg10[%c0_7, %c0_8] : memref<24x32xbf16, #tpu.memory_space<vmem>>, vector<24x32xbf16>
    %cst_9 = arith.constant dense<0.000000e+00> : vector<24x32xf32>
    %8 = tpu.matmul %6, %7, %cst_9 {dimension_numbers = #tpu.dot_dimension_numbers<[1], [0], [0], [1], [0, 0, 1, 1], [], []>} : vector<24x24xbf16>, vector<24x32xbf16>, vector<24x32xf32> -> vector<24x32xf32>
    %c0_10 = arith.constant 0 : index
    %c0_11 = arith.constant 0 : index
    %9 = vector.load %arg11[%c0_10, %c0_11] : memref<1x32xf32, #tpu.memory_space<vmem>>, vector<1x32xf32>
    %10 = vector.broadcast %9 : vector<1x32xf32> to vector<24x32xf32>
    %11 = arith.addf %8, %10 : vector<24x32xf32>
    %c0_12 = arith.constant 0 : index
    %c0_13 = arith.constant 0 : index
    %12 = vector.load %arg3[%c0_12, %c0_13] : memref<16x32xbf16, #tpu.memory_space<vmem>>, vector<16x32xbf16>
    %c0_14 = arith.constant 0 : index
    %c0_15 = arith.constant 0 : index
    %13 = vector.load %arg12[%c0_14, %c0_15] : memref<32x32xbf16, #tpu.memory_space<vmem>>, vector<32x32xbf16>
    %cst_16 = arith.constant dense<0.000000e+00> : vector<16x32xf32>
    %14 = tpu.matmul %12, %13, %cst_16 {dimension_numbers = #tpu.dot_dimension_numbers<[1], [0], [0], [1], [0, 0, 1, 1], [], []>} : vector<16x32xbf16>, vector<32x32xbf16>, vector<16x32xf32> -> vector<16x32xf32>
    %15 = arith.addf %5, %14 : vector<16x32xf32>
    %c0_17 = arith.constant 0 : index
    %c0_18 = arith.constant 0 : index
    %16 = vector.load %arg13[%c0_17, %c0_18] : memref<1x32xf32, #tpu.memory_space<vmem>>, vector<1x32xf32>
    %17 = vector.broadcast %16 : vector<1x32xf32> to vector<16x32xf32>
    %18 = arith.addf %15, %17 : vector<16x32xf32>
    %c0_19 = arith.constant 0 : index
    %c0_20 = arith.constant 0 : index
    %19 = vector.load %arg4[%c0_19, %c0_20] : memref<24x32xbf16, #tpu.memory_space<vmem>>, vector<24x32xbf16>
    %c0_21 = arith.constant 0 : index
    %c0_22 = arith.constant 0 : index
    %20 = vector.load %arg14[%c0_21, %c0_22] : memref<32x32xbf16, #tpu.memory_space<vmem>>, vector<32x32xbf16>
    %cst_23 = arith.constant dense<0.000000e+00> : vector<24x32xf32>
    %21 = tpu.matmul %19, %20, %cst_23 {dimension_numbers = #tpu.dot_dimension_numbers<[1], [0], [0], [1], [0, 0, 1, 1], [], []>} : vector<24x32xbf16>, vector<32x32xbf16>, vector<24x32xf32> -> vector<24x32xf32>
    %22 = arith.addf %11, %21 : vector<24x32xf32>
    %c0_24 = arith.constant 0 : index
    %c0_25 = arith.constant 0 : index
    %23 = vector.load %arg15[%c0_24, %c0_25] : memref<1x32xf32, #tpu.memory_space<vmem>>, vector<1x32xf32>
    %24 = vector.broadcast %23 : vector<1x32xf32> to vector<24x32xf32>
    %25 = arith.addf %22, %24 : vector<24x32xf32>
    %c0_26 = arith.constant 0 : index
    %c0_27 = arith.constant 0 : index
    %26 = vector.load %arg5[%c0_26, %c0_27] : memref<24x32xf32, #tpu.memory_space<vmem>>, vector<24x32xf32>
    %27 = arith.addf %25, %26 : vector<24x32xf32>
    %c0_28 = arith.constant 0 : index
    %c0_29 = arith.constant 0 : index
    %28 = vector.load %arg7[%c0_28, %c0_29] : memref<16x24xbf16, #tpu.memory_space<vmem>>, vector<16x24xbf16>
    %c0_30 = arith.constant 0 : index
    %c0_31 = arith.constant 0 : index
    %29 = vector.load %arg6[%c0_30, %c0_31] : memref<24x16xbf16, #tpu.memory_space<vmem>>, vector<24x16xbf16>
    %30 = arith.truncf %27 : vector<24x32xf32> to vector<24x32xbf16>
    %cst_32 = arith.constant dense<0.000000e+00> : vector<16x32xf32>
    %31 = tpu.matmul %28, %30, %cst_32 {dimension_numbers = #tpu.dot_dimension_numbers<[1], [0], [0], [1], [0, 0, 1, 1], [], []>} : vector<16x24xbf16>, vector<24x32xbf16>, vector<16x32xf32> -> vector<16x32xf32>
    %32 = tpu.concatenate %31, %18 in 1 : vector<16x32xf32>, vector<16x32xf32> -> vector<16x64xf32>
    %c0_33 = arith.constant 0 : index
    %c0_34 = arith.constant 0 : index
    %33 = vector.load %arg18[%c0_33, %c0_34] : memref<64x32xbf16, #tpu.memory_space<vmem>>, vector<64x32xbf16>
    %34 = arith.truncf %32 : vector<16x64xf32> to vector<16x64xbf16>
    %cst_35 = arith.constant dense<0.000000e+00> : vector<16x32xf32>
    %35 = tpu.matmul %34, %33, %cst_35 {dimension_numbers = #tpu.dot_dimension_numbers<[1], [0], [0], [1], [0, 0, 1, 1], [], []>} : vector<16x64xbf16>, vector<64x32xbf16>, vector<16x32xf32> -> vector<16x32xf32>
    %c0_36 = arith.constant 0 : index
    %c0_37 = arith.constant 0 : index
    %36 = vector.load %arg19[%c0_36, %c0_37] : memref<1x32xf32, #tpu.memory_space<vmem>>, vector<1x32xf32>
    %37 = vector.broadcast %36 : vector<1x32xf32> to vector<16x32xf32>
    %38 = arith.addf %35, %37 : vector<16x32xf32>
    %cst_38 = arith.constant dense<0.000000e+00> : vector<16xf32>
    %39 = vector.multi_reduction <add>, %38, %cst_38 [1] : vector<16x32xf32> to vector<16xf32>
    %40 = vector.shape_cast %39 : vector<16xf32> to vector<16x1xf32>
    %cst_39 = arith.constant 3.200000e+01 : f32
    %41 = vector.broadcast %cst_39 : f32 to vector<16x1xf32>
    %42 = arith.divf %40, %41 : vector<16x1xf32>
    %43 = vector.broadcast %42 : vector<16x1xf32> to vector<16x32xf32>
    %44 = arith.subf %38, %43 : vector<16x32xf32>
    %45 = arith.mulf %44, %44 : vector<16x32xf32>
    %cst_40 = arith.constant dense<0.000000e+00> : vector<16xf32>
    %46 = vector.multi_reduction <add>, %45, %cst_40 [1] : vector<16x32xf32> to vector<16xf32>
    %47 = vector.shape_cast %46 : vector<16xf32> to vector<16x1xf32>
    %cst_41 = arith.constant 3.200000e+01 : f32
    %48 = vector.broadcast %cst_41 : f32 to vector<16x1xf32>
    %49 = arith.divf %47, %48 : vector<16x1xf32>
    %50 = vector.broadcast %42 : vector<16x1xf32> to vector<16x32xf32>
    %51 = arith.subf %38, %50 : vector<16x32xf32>
    %cst_42 = arith.constant 9.99999974E-6 : f32
    %52 = vector.broadcast %cst_42 : f32 to vector<16x1xf32>
    %53 = arith.addf %49, %52 : vector<16x1xf32>
    %54 = math.rsqrt %53 : vector<16x1xf32>
    %55 = vector.broadcast %54 : vector<16x1xf32> to vector<16x32xf32>
    %56 = arith.mulf %51, %55 : vector<16x32xf32>
    %c0_43 = arith.constant 0 : index
    %c0_44 = arith.constant 0 : index
    %57 = vector.load %arg20[%c0_43, %c0_44] : memref<1x32xf32, #tpu.memory_space<vmem>>, vector<1x32xf32>
    %58 = vector.broadcast %57 : vector<1x32xf32> to vector<16x32xf32>
    %59 = arith.mulf %56, %58 : vector<16x32xf32>
    %c0_45 = arith.constant 0 : index
    %c0_46 = arith.constant 0 : index
    %60 = vector.load %arg21[%c0_45, %c0_46] : memref<1x32xf32, #tpu.memory_space<vmem>>, vector<1x32xf32>
    %61 = vector.broadcast %60 : vector<1x32xf32> to vector<16x32xf32>
    %62 = arith.addf %59, %61 : vector<16x32xf32>
    %cst_47 = arith.constant 0.000000e+00 : f32
    %63 = vector.broadcast %cst_47 : f32 to vector<16x32xf32>
    %64 = arith.maximumf %62, %63 : vector<16x32xf32>
    %65 = arith.truncf %18 : vector<16x32xf32> to vector<16x32xbf16>
    %cst_48 = arith.constant dense<0.000000e+00> : vector<24x32xf32>
    %66 = tpu.matmul %29, %65, %cst_48 {dimension_numbers = #tpu.dot_dimension_numbers<[1], [0], [0], [1], [0, 0, 1, 1], [], []>} : vector<24x16xbf16>, vector<16x32xbf16>, vector<24x32xf32> -> vector<24x32xf32>
    %67 = tpu.concatenate %66, %27 in 1 : vector<24x32xf32>, vector<24x32xf32> -> vector<24x64xf32>
    %c0_49 = arith.constant 0 : index
    %c0_50 = arith.constant 0 : index
    %68 = vector.load %arg16[%c0_49, %c0_50] : memref<64x32xbf16, #tpu.memory_space<vmem>>, vector<64x32xbf16>
    %69 = arith.truncf %67 : vector<24x64xf32> to vector<24x64xbf16>
    %cst_51 = arith.constant dense<0.000000e+00> : vector<24x32xf32>
    %70 = tpu.matmul %69, %68, %cst_51 {dimension_numbers = #tpu.dot_dimension_numbers<[1], [0], [0], [1], [0, 0, 1, 1], [], []>} : vector<24x64xbf16>, vector<64x32xbf16>, vector<24x32xf32> -> vector<24x32xf32>
    %c0_52 = arith.constant 0 : index
    %c0_53 = arith.constant 0 : index
    %71 = vector.load %arg17[%c0_52, %c0_53] : memref<1x32xf32, #tpu.memory_space<vmem>>, vector<1x32xf32>
    %72 = vector.broadcast %71 : vector<1x32xf32> to vector<24x32xf32>
    %73 = arith.addf %70, %72 : vector<24x32xf32>
    %cst_54 = arith.constant dense<0.000000e+00> : vector<24xf32>
    %74 = vector.multi_reduction <add>, %73, %cst_54 [1] : vector<24x32xf32> to vector<24xf32>
    %75 = vector.shape_cast %74 : vector<24xf32> to vector<24x1xf32>
    %cst_55 = arith.constant 3.200000e+01 : f32
    %76 = vector.broadcast %cst_55 : f32 to vector<24x1xf32>
    %77 = arith.divf %75, %76 : vector<24x1xf32>
    %78 = vector.broadcast %77 : vector<24x1xf32> to vector<24x32xf32>
    %79 = arith.subf %73, %78 : vector<24x32xf32>
    %80 = arith.mulf %79, %79 : vector<24x32xf32>
    %cst_56 = arith.constant dense<0.000000e+00> : vector<24xf32>
    %81 = vector.multi_reduction <add>, %80, %cst_56 [1] : vector<24x32xf32> to vector<24xf32>
    %82 = vector.shape_cast %81 : vector<24xf32> to vector<24x1xf32>
    %cst_57 = arith.constant 3.200000e+01 : f32
    %83 = vector.broadcast %cst_57 : f32 to vector<24x1xf32>
    %84 = arith.divf %82, %83 : vector<24x1xf32>
    %85 = vector.broadcast %77 : vector<24x1xf32> to vector<24x32xf32>
    %86 = arith.subf %73, %85 : vector<24x32xf32>
    %cst_58 = arith.constant 9.99999974E-6 : f32
    %87 = vector.broadcast %cst_58 : f32 to vector<24x1xf32>
    %88 = arith.addf %84, %87 : vector<24x1xf32>
    %89 = math.rsqrt %88 : vector<24x1xf32>
    %90 = vector.broadcast %89 : vector<24x1xf32> to vector<24x32xf32>
    %91 = arith.mulf %86, %90 : vector<24x32xf32>
    %c0_59 = arith.constant 0 : index
    %c0_60 = arith.constant 0 : index
    %92 = vector.load %arg22[%c0_59, %c0_60] : memref<1x32xf32, #tpu.memory_space<vmem>>, vector<1x32xf32>
    %93 = vector.broadcast %92 : vector<1x32xf32> to vector<24x32xf32>
    %94 = arith.mulf %91, %93 : vector<24x32xf32>
    %c0_61 = arith.constant 0 : index
    %c0_62 = arith.constant 0 : index
    %95 = vector.load %arg23[%c0_61, %c0_62] : memref<1x32xf32, #tpu.memory_space<vmem>>, vector<1x32xf32>
    %96 = vector.broadcast %95 : vector<1x32xf32> to vector<24x32xf32>
    %97 = arith.addf %94, %96 : vector<24x32xf32>
    %cst_63 = arith.constant 0.000000e+00 : f32
    %98 = vector.broadcast %cst_63 : f32 to vector<24x32xf32>
    %99 = arith.maximumf %97, %98 : vector<24x32xf32>
    %100 = vector.extract_strided_slice %28 {offsets = [0, 0], sizes = [4, 24], strides = [1, 1]} : vector<16x24xbf16> to vector<4x24xbf16>
    %101 = vector.extract_strided_slice %64 {offsets = [0, 0], sizes = [4, 32], strides = [1, 1]} : vector<16x32xf32> to vector<4x32xf32>
    %102 = arith.truncf %99 : vector<24x32xf32> to vector<24x32xbf16>
    %cst_64 = arith.constant dense<0.000000e+00> : vector<4x32xf32>
    %103 = tpu.matmul %100, %102, %cst_64 {dimension_numbers = #tpu.dot_dimension_numbers<[1], [0], [0], [1], [0, 0, 1, 1], [], []>} : vector<4x24xbf16>, vector<24x32xbf16>, vector<4x32xf32> -> vector<4x32xf32>
    %104 = tpu.concatenate %103, %101 in 1 : vector<4x32xf32>, vector<4x32xf32> -> vector<4x64xf32>
    %c0_65 = arith.constant 0 : index
    %c0_66 = arith.constant 0 : index
    %105 = vector.load %arg24[%c0_65, %c0_66] : memref<64x32xbf16, #tpu.memory_space<vmem>>, vector<64x32xbf16>
    %106 = arith.truncf %104 : vector<4x64xf32> to vector<4x64xbf16>
    %cst_67 = arith.constant dense<0.000000e+00> : vector<4x32xf32>
    %107 = tpu.matmul %106, %105, %cst_67 {dimension_numbers = #tpu.dot_dimension_numbers<[1], [0], [0], [1], [0, 0, 1, 1], [], []>} : vector<4x64xbf16>, vector<64x32xbf16>, vector<4x32xf32> -> vector<4x32xf32>
    %c0_68 = arith.constant 0 : index
    %c0_69 = arith.constant 0 : index
    %108 = vector.load %arg25[%c0_68, %c0_69] : memref<1x32xf32, #tpu.memory_space<vmem>>, vector<1x32xf32>
    %109 = vector.broadcast %108 : vector<1x32xf32> to vector<4x32xf32>
    %110 = arith.addf %107, %109 : vector<4x32xf32>
    %cst_70 = arith.constant dense<0.000000e+00> : vector<4xf32>
    %111 = vector.multi_reduction <add>, %110, %cst_70 [1] : vector<4x32xf32> to vector<4xf32>
    %112 = vector.shape_cast %111 : vector<4xf32> to vector<4x1xf32>
    %cst_71 = arith.constant 3.200000e+01 : f32
    %113 = vector.broadcast %cst_71 : f32 to vector<4x1xf32>
    %114 = arith.divf %112, %113 : vector<4x1xf32>
    %115 = vector.broadcast %114 : vector<4x1xf32> to vector<4x32xf32>
    %116 = arith.subf %110, %115 : vector<4x32xf32>
    %117 = arith.mulf %116, %116 : vector<4x32xf32>
    %cst_72 = arith.constant dense<0.000000e+00> : vector<4xf32>
    %118 = vector.multi_reduction <add>, %117, %cst_72 [1] : vector<4x32xf32> to vector<4xf32>
    %119 = vector.shape_cast %118 : vector<4xf32> to vector<4x1xf32>
    %cst_73 = arith.constant 3.200000e+01 : f32
    %120 = vector.broadcast %cst_73 : f32 to vector<4x1xf32>
    %121 = arith.divf %119, %120 : vector<4x1xf32>
    %122 = vector.broadcast %114 : vector<4x1xf32> to vector<4x32xf32>
    %123 = arith.subf %110, %122 : vector<4x32xf32>
    %cst_74 = arith.constant 9.99999974E-6 : f32
    %124 = vector.broadcast %cst_74 : f32 to vector<4x1xf32>
    %125 = arith.addf %121, %124 : vector<4x1xf32>
    %126 = math.rsqrt %125 : vector<4x1xf32>
    %127 = vector.broadcast %126 : vector<4x1xf32> to vector<4x32xf32>
    %128 = arith.mulf %123, %127 : vector<4x32xf32>
    %c0_75 = arith.constant 0 : index
    %c0_76 = arith.constant 0 : index
    %129 = vector.load %arg26[%c0_75, %c0_76] : memref<1x32xf32, #tpu.memory_space<vmem>>, vector<1x32xf32>
    %130 = vector.broadcast %129 : vector<1x32xf32> to vector<4x32xf32>
    %131 = arith.mulf %128, %130 : vector<4x32xf32>
    %c0_77 = arith.constant 0 : index
    %c0_78 = arith.constant 0 : index
    %132 = vector.load %arg27[%c0_77, %c0_78] : memref<1x32xf32, #tpu.memory_space<vmem>>, vector<1x32xf32>
    %133 = vector.broadcast %132 : vector<1x32xf32> to vector<4x32xf32>
    %134 = arith.addf %131, %133 : vector<4x32xf32>
    %cst_79 = arith.constant 0.000000e+00 : f32
    %135 = vector.broadcast %cst_79 : f32 to vector<4x32xf32>
    %136 = arith.maximumf %134, %135 : vector<4x32xf32>
    %c0_80 = arith.constant 0 : index
    %c0_81 = arith.constant 0 : index
    %137 = vector.load %arg28[%c0_80, %c0_81] : memref<32x8xbf16, #tpu.memory_space<vmem>>, vector<32x8xbf16>
    %138 = arith.truncf %136 : vector<4x32xf32> to vector<4x32xbf16>
    %cst_82 = arith.constant dense<0.000000e+00> : vector<4x8xf32>
    %139 = tpu.matmul %138, %137, %cst_82 {dimension_numbers = #tpu.dot_dimension_numbers<[1], [0], [0], [1], [0, 0, 1, 1], [], []>} : vector<4x32xbf16>, vector<32x8xbf16>, vector<4x8xf32> -> vector<4x8xf32>
    %c0_83 = arith.constant 0 : index
    %c0_84 = arith.constant 0 : index
    %140 = vector.load %arg29[%c0_83, %c0_84] : memref<1x8xf32, #tpu.memory_space<vmem>>, vector<1x8xf32>
    %141 = vector.broadcast %140 : vector<1x8xf32> to vector<4x8xf32>
    %142 = arith.addf %139, %141 : vector<4x8xf32>
    %c0_85 = arith.constant 0 : index
    %c0_86 = arith.constant 0 : index
    %143 = vector.load %arg30[%c0_85, %c0_86] : memref<4x8xf32, #tpu.memory_space<vmem>>, vector<4x8xf32>
    tpu.vector_store %arg30[%c0_85, %c0_86], %142 {strides = array<i32>} : memref<4x8xf32, #tpu.memory_space<vmem>>, vector<4x8xf32>,
    return
  }
  func.func @transform_0(%arg0: i32) -> (i32, i32) {
    %c0_i32 = arith.constant 0 : i32
    %c0_i32_0 = arith.constant 0 : i32
    %c0_i32_1 = arith.constant 0 : i32
    return %c0_i32, %c0_i32_0 : i32, i32
  }
  func.func @transform_1(%arg0: i32) -> (i32, i32) {
    %c0_i32 = arith.constant 0 : i32
    %c0_i32_0 = arith.constant 0 : i32
    %c0_i32_1 = arith.constant 0 : i32
    return %c0_i32, %c0_i32_0 : i32, i32
  }
  func.func @transform_2(%arg0: i32) -> (i32, i32) {
    %c0_i32 = arith.constant 0 : i32
    %c0_i32_0 = arith.constant 0 : i32
    %c0_i32_1 = arith.constant 0 : i32
    return %c0_i32, %c0_i32_0 : i32, i32
  }
  func.func @transform_3(%arg0: i32) -> (i32, i32) {
    %c0_i32 = arith.constant 0 : i32
    %c0_i32_0 = arith.constant 0 : i32
    %c0_i32_1 = arith.constant 0 : i32
    return %c0_i32, %c0_i32_0 : i32, i32
  }
  func.func @transform_4(%arg0: i32) -> (i32, i32) {
    %c0_i32 = arith.constant 0 : i32
    %c0_i32_0 = arith.constant 0 : i32
    %c0_i32_1 = arith.constant 0 : i32
    return %c0_i32, %c0_i32_0 : i32, i32
  }
  func.func @transform_5(%arg0: i32) -> (i32, i32) {
    %c0_i32 = arith.constant 0 : i32
    %c0_i32_0 = arith.constant 0 : i32
    %c0_i32_1 = arith.constant 0 : i32
    return %c0_i32, %c0_i32_0 : i32, i32
  }
  func.func @transform_6(%arg0: i32) -> (i32, i32) {
    %c0_i32 = arith.constant 0 : i32
    %c0_i32_0 = arith.constant 0 : i32
    %c0_i32_1 = arith.constant 0 : i32
    return %c0_i32, %c0_i32_0 : i32, i32
  }
  func.func @transform_7(%arg0: i32) -> (i32, i32) {
    %c0_i32 = arith.constant 0 : i32
    %c0_i32_0 = arith.constant 0 : i32
    %c0_i32_1 = arith.constant 0 : i32
    return %c0_i32, %c0_i32_0 : i32, i32
  }
  func.func @transform_8(%arg0: i32) -> (i32, i32) {
    %c0_i32 = arith.constant 0 : i32
    %c0_i32_0 = arith.constant 0 : i32
    %c0_i32_1 = arith.constant 0 : i32
    return %c0_i32, %c0_i32_0 : i32, i32
  }
  func.func @transform_9(%arg0: i32) -> (i32, i32) {
    %c0_i32 = arith.constant 0 : i32
    %c0_i32_0 = arith.constant 0 : i32
    %c0_i32_1 = arith.constant 0 : i32
    return %c0_i32, %c0_i32_0 : i32, i32
  }
  func.func @transform_10(%arg0: i32) -> (i32, i32) {
    %c0_i32 = arith.constant 0 : i32
    %c0_i32_0 = arith.constant 0 : i32
    %c0_i32_1 = arith.constant 0 : i32
    return %c0_i32, %c0_i32_0 : i32, i32
  }
  func.func @transform_11(%arg0: i32) -> (i32, i32) {
    %c0_i32 = arith.constant 0 : i32
    %c0_i32_0 = arith.constant 0 : i32
    %c0_i32_1 = arith.constant 0 : i32
    return %c0_i32, %c0_i32_0 : i32, i32
  }
  func.func @transform_12(%arg0: i32) -> (i32, i32) {
    %c0_i32 = arith.constant 0 : i32
    %c0_i32_0 = arith.constant 0 : i32
    %c0_i32_1 = arith.constant 0 : i32
    return %c0_i32, %c0_i32_0 : i32, i32
  }
  func.func @transform_13(%arg0: i32) -> (i32, i32) {
    %c0_i32 = arith.constant 0 : i32
    %c0_i32_0 = arith.constant 0 : i32
    %c0_i32_1 = arith.constant 0 : i32
    return %c0_i32, %c0_i32_0 : i32, i32
  }
  func.func @transform_14(%arg0: i32) -> (i32, i32) {
    %c0_i32 = arith.constant 0 : i32
    %c0_i32_0 = arith.constant 0 : i32
    %c0_i32_1 = arith.constant 0 : i32
    return %c0_i32, %c0_i32_0 : i32, i32
  }
  func.func @transform_15(%arg0: i32) -> (i32, i32) {
    %c0_i32 = arith.constant 0 : i32
    %c0_i32_0 = arith.constant 0 : i32
    %c0_i32_1 = arith.constant 0 : i32
    return %c0_i32, %c0_i32_0 : i32, i32
  }
  func.func @transform_16(%arg0: i32) -> (i32, i32) {
    %c0_i32 = arith.constant 0 : i32
    %c0_i32_0 = arith.constant 0 : i32
    %c0_i32_1 = arith.constant 0 : i32
    return %c0_i32, %c0_i32_0 : i32, i32
  }
  func.func @transform_17(%arg0: i32) -> (i32, i32) {
    %c0_i32 = arith.constant 0 : i32
    %c0_i32_0 = arith.constant 0 : i32
    %c0_i32_1 = arith.constant 0 : i32
    return %c0_i32, %c0_i32_0 : i32, i32
  }
  func.func @transform_18(%arg0: i32) -> (i32, i32) {
    %c0_i32 = arith.constant 0 : i32
    %c0_i32_0 = arith.constant 0 : i32
    %c0_i32_1 = arith.constant 0 : i32
    return %c0_i32, %c0_i32_0 : i32, i32
  }
  func.func @transform_19(%arg0: i32) -> (i32, i32) {
    %c0_i32 = arith.constant 0 : i32
    %c0_i32_0 = arith.constant 0 : i32
    %c0_i32_1 = arith.constant 0 : i32
    return %c0_i32, %c0_i32_0 : i32, i32
  }
  func.func @transform_20(%arg0: i32) -> (i32, i32) {
    %c0_i32 = arith.constant 0 : i32
    %c0_i32_0 = arith.constant 0 : i32
    %c0_i32_1 = arith.constant 0 : i32
    return %c0_i32, %c0_i32_0 : i32, i32
  }
  func.func @transform_21(%arg0: i32) -> (i32, i32) {
    %c0_i32 = arith.constant 0 : i32
    %c0_i32_0 = arith.constant 0 : i32
    %c0_i32_1 = arith.constant 0 : i32
    return %c0_i32, %c0_i32_0 : i32, i32
  }
  func.func @transform_22(%arg0: i32) -> (i32, i32) {
    %c0_i32 = arith.constant 0 : i32
    %c0_i32_0 = arith.constant 0 : i32
    %c0_i32_1 = arith.constant 0 : i32
    return %c0_i32, %c0_i32_0 : i32, i32
  }
  func.func @transform_23(%arg0: i32) -> (i32, i32) {
    %c0_i32 = arith.constant 0 : i32
    %c0_i32_0 = arith.constant 0 : i32
    %c0_i32_1 = arith.constant 0 : i32
    return %c0_i32, %c0_i32_0 : i32, i32
  }
  func.func @transform_24(%arg0: i32) -> (i32, i32) {
    %c0_i32 = arith.constant 0 : i32
    %c0_i32_0 = arith.constant 0 : i32
    %c0_i32_1 = arith.constant 0 : i32
    return %c0_i32, %c0_i32_0 : i32, i32
  }
  func.func @transform_25(%arg0: i32) -> (i32, i32) {
    %c0_i32 = arith.constant 0 : i32
    %c0_i32_0 = arith.constant 0 : i32
    %c0_i32_1 = arith.constant 0 : i32
    return %c0_i32, %c0_i32_0 : i32, i32
  }
  func.func @transform_26(%arg0: i32) -> (i32, i32) {
    %c0_i32 = arith.constant 0 : i32
    %c0_i32_0 = arith.constant 0 : i32
    %c0_i32_1 = arith.constant 0 : i32
    return %c0_i32, %c0_i32_0 : i32, i32
  }
  func.func @transform_27(%arg0: i32) -> (i32, i32) {
    %c0_i32 = arith.constant 0 : i32
    %c0_i32_0 = arith.constant 0 : i32
    %c0_i32_1 = arith.constant 0 : i32
    return %c0_i32, %c0_i32_0 : i32, i32
  }
  func.func @transform_28(%arg0: i32) -> (i32, i32) {
    %c0_i32 = arith.constant 0 : i32
    %c0_i32_0 = arith.constant 0 : i32
    %c0_i32_1 = arith.constant 0 : i32
    return %c0_i32, %c0_i32_0 : i32, i32
  }
  func.func @transform_29(%arg0: i32) -> (i32, i32) {
    %c0_i32 = arith.constant 0 : i32
    %c0_i32_0 = arith.constant 0 : i32
    %c0_i32_1 = arith.constant 0 : i32
    return %c0_i32, %c0_i32_0 : i32, i32
  }
}

</mosaic_0001>

<bundles_post_ra>
// kernel: model_forward.1
= control target key start
LH: loop header
LB: loop body
LE: loop exit
PB: predicated region body
PF: predicated region fallthrough
CT: control target
= control target key end

     0   :  { %s1098_s6 = smov 1   ;;  %s1099_s10 = smov 2   ;;  %s1394_s0 = inlined_call_operand.smem [shape: u32[30], index: -1, kind: input, shape index: {}] }
   0x1   :  { %s1138_s5 = sld [smem:[%s1394_s0]]   ;;  %s1100_s14 = smov 3  }
   0x2   :  { %s1143_s9 = sld [smem:[%s1394_s0 + %s1098_s6]]   ;;  %s1101_s18 = smov 4  }
   0x3   :  { %s1148_s13 = sld [smem:[%s1394_s0 + %s1099_s10]]   ;;  %s1102_s22 = smov 5  }
   0x4   :  { %s1153_s17 = sld [smem:[%s1394_s0 + %s1100_s14]]   ;;  %s1103_s26 = smov 6  }
   0x5   :  { %s1158_s21 = sld [smem:[%s1394_s0 + %s1101_s18]]   ;;  %s1104_s30 = smov 7  }
   0x6   :  { %s1163_s25 = sld [smem:[%s1394_s0 + %s1102_s22]]   ;;  %s1105_s4 = smov 8  }
   0x7   :  { %s1168_s29 = sld [smem:[%s1394_s0 + %s1103_s26]]   ;;  %s1106_s10 = smov 9  }
   0x8   :  { %s1173_s3 = sld [smem:[%s1394_s0 + %s1104_s30]]   ;;  %s1107_s15 = smov 10  }
   0x9   :  { %s1178_s8 = sld [smem:[%s1394_s0 + %s1105_s4]]   ;;  %s1108_s20 = smov 11  }
   0xa   :  { %s1183_s14 = sld [smem:[%s1394_s0 + %s1106_s10]]   ;;  %s1109_s26 = smov 12  }
   0xb   :  { %s1188_s19 = sld [smem:[%s1394_s0 + %s1107_s15]]   ;;  %s1110_s1 = smov 13  }
   0xc   :  { %1399 = sst [smem:[#allocation5_spill]] %s1163_s25  ;;  %s1111_s7 = smov 14  }
   0xd   :  { %s1193_s24 = sld [smem:[%s1394_s0 + %s1108_s20]]   ;;  %s1112_s15 = smov 15  }
   0xe   :  { %s1198_s30 = sld [smem:[%s1394_s0 + %s1109_s26]]   ;;  %s1113_s22 = smov 16  }
   0xf   :  { %s1203_s6 = sld [smem:[%s1394_s0 + %s1110_s1]]   ;;  %s1114_s28 = smov 17  }
  0x10   :  { %s1208_s12 = sld [smem:[%s1394_s0 + %s1111_s7]]   ;;  %s1115_s7 = smov 18  }
  0x11   :  { %s1213_s20 = sld [smem:[%s1394_s0 + %s1112_s15]]   ;;  %s1116_s15 = smov 19  }
  0x12   :  { %s1218_s27 = sld [smem:[%s1394_s0 + %s1113_s22]]   ;;  %s1117_s22 = smov 20  }
  0x13   :  { %s1223_s4 = sld [smem:[%s1394_s0 + %s1114_s28]]   ;;  %s1118_s28 = smov 21  }
  0x14   :  { %s1228_s25 = sld [smem:[%s1394_s0 + %s1115_s7]]   ;;  %s1119_s7 = smov 22  }
  0x17   :  { %1400 = sst [smem:[#allocation6_spill]] %s1213_s20 }
  0x18   :  { %1401 = sst [smem:[#allocation7_spill]] %s1218_s27 }
  0x19   :  { %1402 = sst [smem:[#allocation8_spill]] %s1223_s4 }
  0x1a   :  { %1403 = sst [smem:[#allocation9_spill]] %s1228_s25 }
  0x1b   :  { %s1233_s20 = sld [smem:[%s1394_s0 + %s1116_s15]]   ;;  %s1120_s15 = smov 23  }
  0x1c   :  { %s1238_s27 = sld [smem:[%s1394_s0 + %s1117_s22]]   ;;  %s1121_s22 = smov 24  }
  0x1d   :  { %s1243_s4 = sld [smem:[%s1394_s0 + %s1118_s28]]   ;;  %s1122_s28 = smov 25  }
  0x1e   :  { %s1248_s25 = sld [smem:[%s1394_s0 + %s1119_s7]]   ;;  %s1123_s7 = smov 26  }
  0x21   :  { %1404 = sst [smem:[#allocation10_spill]] %s1233_s20 }
  0x22   :  { %1405 = sst [smem:[#allocation11_spill]] %s1238_s27 }
  0x23   :  { %1406 = sst [smem:[#allocation12_spill]] %s1243_s4 }
  0x24   :  { %1407 = sst [smem:[#allocation13_spill]] %s1248_s25 }
  0x25   :  { %s1253_s20 = sld [smem:[%s1394_s0 + %s1120_s15]]   ;;  %s1124_s15 = smov 27  }
  0x26   :  { %s1258_s27 = sld [smem:[%s1394_s0 + %s1121_s22]]   ;;  %s1125_s22 = smov 28  }
  0x27   :  { %s1263_s4 = sld [smem:[%s1394_s0 + %s1122_s28]]   ;;  %s1126_s28 = smov 29  }
  0x28   :  { %s1268_s25 = sld [smem:[%s1394_s0 + %s1123_s7]]  }
  0x2b   :  { %1408 = sst [smem:[#allocation14_spill]] %s1253_s20 }
  0x2c   :  { %1409 = sst [smem:[#allocation15_spill]] %s1258_s27 }
  0x2d   :  { %1410 = sst [smem:[#allocation16_spill]] %s1263_s4 }
  0x2e   :  { %s1273_s20 = sld [smem:[%s1394_s0 + %s1124_s15]]  }
  0x2f   :  { %s1278_s27 = sld [smem:[%s1394_s0 + %s1125_s22]]  }
  0x30   :  { %s1283_s4 = sld [smem:[%s1394_s0 + %s1126_s28]]  }
  0x31   :  { %v987_v0 = vld [vmem:[%s1203_s6 + $0x8] sm:$0xff]  ;;  %vm195_vm0 = vcmask 1043456   ;;  %v986_v3 = vld [vmem:[%s1203_s6] sm:$0xff]  ;;  %vm240_vm1 = vcmask 261120   ;;  %vm143_vm2 = vcmask 130048  }
  0x32   :  { %v166_v1 = vld [vmem:[%s1183_s14 + $0x8] sm:$0xf]  ;;  %305 = vmatpush.bf16.msra.mxu3 %v987_v0  ;;  %v985_v6 = vld [vmem:[%s1153_s17] sm:$0xff] }
  0x33   :  { %v184_v2 = vunpack.c.l.b16 %v166_v1  ;;  %v984_v4 = vld [vmem:[%s1193_s24 + $0x8] sm:$0xff]  ;;  %v979_v7 = vld [vmem:[%s1173_s3] sm:$0xff] }
  0x34   :  { %v981_v8 = vld [vmem:[%s1183_s14] sm:$0xff]  ;;  %250 = vmatpush.bf16.msra.mxu2 %v984_v4  ;;  %154 = vmatpush.bf16.msra.mxu0 %v979_v7 }
  0x35   :  { %v186_v5 = vpack.c.b16 %v184_v2, %v184_v2  ;;  %v983_v9 = vld [vmem:[%s1193_s24] sm:$0xff] }
  0x36   :  { %v978_v10 = vld [vmem:[%s1138_s5] sm:$0xff]  ;;  %306 = vmatpush.bf16.msra.mxu3 %v986_v3 }
  0x37   :  { %v197_v11 = vsel %vm195_vm0, %v186_v5, 0  ;;  %v982_v12 = vld [vmem:[%s1148_s13] sm:$0xff]  ;;  %867 = vmatmul.msk.bf16.vlgmr.msra.gmra.mxu0 %vm143_vm2, %v978_v10 }
  0x38   :  { %205 = vmatpush.bf16.msra.mxu1 %v197_v11  ;;  %v980_v13 = vld [vmem:[%s1143_s9] sm:$0xff]  ;;  %251 = vmatpush.bf16.msra.mxu2 %v983_v9 }
  0x39   :  { %903 = vmatmul.msk.bf16.vlgmr.msra.gmra.mxu3 %vm240_vm1, %v985_v6 }
  0x3a   :  { %64 = vsyncpa [#allocation3], 0  ;;  %vm188_vm3 = vcmask 195584   ;;  %v268_v14 = vld [vmem:[%s1153_s17 + $0x8] sm:$0xf]  ;;  %v327_v39 = vld [vmem:[%s1158_s21] sm:$0xff] }
  0x3b   :  { %890 = vmatmul.msk.bf16.vlgmr.msra.gmra.mxu2 %vm240_vm1, %v982_v12  ;;  %v278_v15 = vunpack.c.l.b16 %v268_v14  ;;  %v163_v16 = vld [vmem:[%s1143_s9 + $0x8] sm:$0xf]  ;;  %v1046_v21 = vld [vmem:[%s1188_s19] ss:$0 sm:$0xff]  ;;  %s1127_s0 = smov 32   ;;  %v329_v54 = vld [vmem:[%s1158_s21 + $0x10] sm:$0xff] }
  0x3c   :  { %206 = vmatpush.bf16.msra.mxu1 %v981_v8  ;;  %v176_v18 = vunpack.c.l.b16 %v163_v16  ;;  %v1048_v24 = vld [vmem:[%s1178_s8] ss:$0 sm:$0xff]  ;;  %v328_v40 = vld [vmem:[%s1158_s21 + $0x8] sm:$0xff]  ;;  %s1411_s5 = sld [smem:[#allocation5_spill]]  ;;  %vm412_vm4 = vcmask 523264   ;;  %s1129_s6 = smov [#allocation2]  }
  0x3d   :  { %v280_v17 = vpack.c.b16 %v278_v15, %v278_v15  ;;  %v1047_v30 = vld [vmem:[%s1208_s12] ss:$0 sm:$0xff]  ;;  %s1412_s9 = sld [smem:[#allocation8_spill]]  ;;  %s819_s12 = sshll.u32 %s1129_s6, 4  ;;  %s820_s12 = int_to_ptr.vmem [resolvable:$true] %s819_s12 }
  0x3e   :  { %v178_v19 = vpack.c.b16 %v176_v18, %v176_v18  ;;  %v1049_v36 = vld [vmem:[%s1198_s30] ss:$0 sm:$0xff]  ;;  %s1413_s13 = sld [smem:[#allocation6_spill]]  ;;  %s1088_s10 = scalar_lea.hbm %s1283_s4, 4 }
  0x3f   :  { %876 = vmatmul.msk.bf16.vlgmr.msra.gmra.mxu1 %vm188_vm3, %v980_v13  ;;  %v988_v63 = vld [vmem:[%s1168_s29] sm:$0xff]  ;;  %s1414_s17 = sld [smem:[#allocation7_spill]] }
  0x40   :  { %s1415_s21 = sld [smem:[#allocation9_spill]] }
  0x41   :  { %s1416_s3 = sld [smem:[#allocation12_spill]] }
  0x42   :  { %v989_v0 = vld [vmem:[%s1411_s5] sm:$0xff]  ;;  %v337_v1 = vld [vmem:[%s1411_s5 + $0x8] sm:$0xf]  ;;  %s1417_s8 = sld [smem:[#allocation13_spill]] }
  0x43   :  { %v475_v2 = vunpack.c.l.b16 %v337_v1  ;;  %v993_v4 = vld [vmem:[%s1412_s9 + $0x18] sm:$0xff]  ;;  %v992_v5 = vld [vmem:[%s1412_s9 + $0x10] sm:$0xff]  ;;  %v991_v6 = vld [vmem:[%s1412_s9 + $0x8] sm:$0xff]  ;;  %s1418_s14 = sld [smem:[#allocation14_spill]] }
  0x44   :  { %420 = vmatpush.bf16.msrb.mxu2 %v993_v4  ;;  %v997_v7 = vld [vmem:[%s1413_s13 + $0x18] sm:$0xff]  ;;  %v990_v8 = vld [vmem:[%s1412_s9] sm:$0xff]  ;;  %v996_v9 = vld [vmem:[%s1413_s13 + $0x10] sm:$0xff]  ;;  %s1419_s19 = sld [smem:[#allocation10_spill]] }
  0x45   :  { %v477_v3 = vpack.c.b16 %v475_v2, %v475_v2  ;;  %565 = vmatpush.bf16.msrb.mxu1 %v997_v7  ;;  %v995_v10 = vld [vmem:[%s1413_s13 + $0x8] sm:$0xff]  ;;  %v994_v11 = vld [vmem:[%s1413_s13] sm:$0xff]  ;;  %s1420_s24 = sld [smem:[#allocation11_spill]] }
  0x46   :  { %s1422_s30 = sld [smem:[#allocation16_spill]] }
  0x48   :  { %421 = vmatpush.bf16.msrb.mxu2 %v992_v5 }
  0x49   :  { %904 = vmatmul.msk.bf16.gmra.mxu3 %vm240_vm1, %v280_v17  ;;  %566 = vmatpush.bf16.msrb.mxu1 %v996_v9 }
  0x4c   :  { %422 = vmatpush.bf16.msrb.mxu2 %v991_v6 }
  0x4d   :  { %567 = vmatpush.bf16.msrb.mxu1 %v995_v10 }
  0x4f   :  { %877 = vmatmul.msk.bf16.gmra.mxu1 %vm188_vm3, %v178_v19 }
  0x50   :  { %423 = vmatpush.bf16.msrb.mxu2 %v990_v8 }
  0x51   :  { %568 = vmatpush.bf16.msrb.mxu1 %v994_v11 }
  0xb4   :  { %v156_v20 = vpop.f32.mrf.mxu0 }
  0xb5   :  { %v157_v27 = vadd.f32 %v1048_v24, %v156_v20 }
  0xbc   :  { %v208_v22 = vpop.f32.mrf.mxu1  ;;  %v308_v23 = vpop.f32.mrf.mxu3 }
  0xbd   :  { %v209_v25 = vadd.f32 %v1046_v21, %v208_v22  ;;  %v158_v28 = vpop.f32.mrf.mxu0 }
  0xbe   :  { %v253_v26 = vpop.f32.mrf.mxu2  ;;  %v159_v33 = vadd.f32 %v1048_v24, %v158_v28 }
  0xbf   :  { %v317_v29 = vadd.f32 %v308_v23, %v209_v25  ;;  %v258_v35 = vadd.f32 %v253_v26, %v157_v27 }
  0xc1   :  { %v324_v37 = vadd.f32 %v1047_v30, %v317_v29  ;;  %v264_v44 = vadd.f32 %v1049_v36, %v258_v35 }
  0xc3   :  { %v330_v45 = vadd.f32 %v327_v39, %v324_v37 }
  0xc4   :  { %v210_v31 = vpop.f32.mrf.mxu1  ;;  %v310_v34 = vpop.f32.mrf.mxu3 }
  0xc5   :  { %v211_v32 = vadd.f32 %v1046_v21, %v210_v31 }
  0xc6   :  { %v255_v41 = vpop.f32.mrf.mxu2 }
  0xc7   :  { %v318_v38 = vadd.f32 %v310_v34, %v211_v32  ;;  %v259_v43 = vadd.f32 %v255_v41, %v159_v33  ;;  %v1051_v34 = vld [vmem:[%s1414_s17] ss:$0 sm:$0xff] }
  0xc9   :  { %v325_v42 = vadd.f32 %v1047_v30, %v318_v38  ;;  %v265_v47 = vadd.f32 %v1049_v36, %v259_v43 }
  0xcb   :  { %v331_v46 = vadd.f32 %v328_v40, %v325_v42  ;;  %v1041_v52 = vpack.i.bf16 %v265_v47, %v264_v44  ;;  %v469_v61 = vpack.c.bf16 %v265_v47, %v264_v44 }
  0xcc   :  { %v213_v48 = vpop.f32.mrf.mxu1  ;;  %v313_v51 = vpop.f32.mrf.mxu3 }
  0xcd   :  { %v214_v49 = vadd.f32 %v1046_v21, %v213_v48  ;;  %v1036_v50 = vpack.i.bf16 %v331_v46, %v330_v45  ;;  %1042 = vrot.lane.b32.xlu1 %v1041_v52, %s1127_s0  ;;  %v338_v62 = vpack.c.bf16 %v331_v46, %v330_v45  ;;  %v1128_v46 = vmov 32.0  }
  0xce   :  { %1060 = vrcp.f32 %v1128_v46 }
  0xcf   :  { %v319_v53 = vadd.f32 %v313_v51, %v214_v49  ;;  %1037 = vrot.lane.b32.xlu0 %v1036_v50, %s1127_s0 }
  0xd1   :  { %v326_v55 = vadd.f32 %v1047_v30, %v319_v53 }
  0xd3   :  { %v332_v56 = vadd.f32 %v329_v54, %v326_v55 }
  0xd4   :  { %v215_v57 = vpop.f32.mrf.mxu1  ;;  %v315_v59 = vpop.f32.mrf.mxu3 }
  0xd5   :  { %v339_v58 = vpack.c.bf16 %v332_v56, %v332_v56  ;;  %v1061_v47 = vpop.eup %1060 }
  0xd6   :  { %v433_v48 = vmul.f32 32.0, %v1061_v47  ;;  %vm437_vm5 = vweird.f32 %v1061_v47 }
  0xd7   :  { %509 = vrot.lane.b32.xlu0 %v332_v56, %s1127_s0  ;;  %v349_v60 = vsel %vm195_vm0, %v339_v58, 0 }
  0xd8   :  { %357 = vmatpush.bf16.msrb.mxu0 %v349_v60  ;;  %v434_v49 = vsub.f32 1.0, %v433_v48  ;;  %v1053_v48 = vld [vmem:[%s1417_s8] ss:$0 sm:$0xff] }
  0xda   :  { %v435_v50 = vmul.f32 %v1061_v47, %v434_v49 }
  0xdc   :  { %358 = vmatpush.bf16.msrb.mxu0 %v338_v62  ;;  %v436_v51 = vadd.f32 %v1061_v47, %v435_v50  ;;  %v1050_v62 = vld [vmem:[%s1415_s21] ss:$0 sm:$0xff] }
  0xde   :  { %v1342_v52 = vsel %vm437_vm5, %v1061_v47, %v436_v51 }
  0xdf   :  { %909 = vmatmul.msk.bf16.vlgmr.msrb.gmra.mxu0 %vm188_vm3, %v988_v63 }
  0xe0   :  { %491 = vmatpush.bf16.msra.mxu0 %v469_v61 }
  0xef   :  { %931 = vmatmul.msk.bf16.vlgmr.msra.gmra.mxu0 %vm143_vm2, %v989_v0 }
  0xff   :  { %932 = vmatmul.msk.bf16.gmra.mxu0 %vm143_vm2, %v477_v3 }
 0x13f   :  { %v1043_v13 = vpop.permute.xlu1 %1042 }
 0x140   :  { %v1045_v14 = vunpack.i.h.bf16 %v1043_v13  ;;  %v1044_v15 = vunpack.i.l.bf16 %v1043_v13 }
 0x141   :  { %v1038_v21 = vpop.permute.xlu0 %1037 }
 0x142   :  { %v1040_v22 = vunpack.i.h.bf16 %v1038_v21  ;;  %v1039_v23 = vunpack.i.l.bf16 %v1038_v21 }
 0x149   :  { %v510_v29 = vpop.permute.xlu0 %509 }
 0x15c   :  { %v360_v12 = vpop.f32.mrf.mxu0 }
 0x15d   :  { %v373_v17 = vsel %vm240_vm1, %v360_v12, %v1044_v15 }
 0x164   :  { %v362_v16 = vpop.f32.mrf.mxu0 }
 0x165   :  { %v374_v18 = vsel %vm240_vm1, %v362_v16, %v1045_v14 }
 0x166   :  { %v383_v19 = vpack.c.bf16 %v374_v18, %v373_v17 }
 0x168   :  { %926 = vmatmul.msk.bf16.vlgmr.msrb.gmra.mxu2 %vm412_vm4, %v383_v19 }
 0x16c   :  { %v493_v20 = vpop.f32.mrf.mxu0 }
 0x16d   :  { %v514_v25 = vsel %vm240_vm1, %v493_v20, %v1039_v23 }
 0x174   :  { %v495_v24 = vpop.f32.mrf.mxu0 }
 0x175   :  { %v515_v26 = vsel %vm240_vm1, %v495_v24, %v1040_v22 }
 0x176   :  { %v525_v27 = vpack.c.bf16 %v515_v26, %v514_v25 }
 0x178   :  { %949 = vmatmul.msk.bf16.vlgmr.msrb.gmra.mxu1 %vm412_vm4, %v525_v27 }
 0x17c   :  { %v498_v28 = vpop.f32.mrf.mxu0 }
 0x17d   :  { %v516_v30 = vsel %vm240_vm1, %v498_v28, %v510_v29 }
 0x17e   :  { %v526_v32 = vpack.c.bf16 %v516_v30, %v516_v30 }
 0x184   :  { %v500_v31 = vpop.f32.mrf.mxu0 }
 0x188   :  { %950 = vmatmul.msk.bf16.gmra.mxu1 %vm412_vm4, %v526_v32 }
 0x1eb   :  { %v425_v33 = vpop.f32.mrf.mxu2 }
 0x1ec   :  { %v426_v2 = vadd.f32 %v1050_v62, %v425_v33 }
 0x1ee   :  { %v429_v5 = vsel %vm240_vm1, %v426_v2, 0.0 }
 0x1f3   :  { %v427_v35 = vpop.f32.mrf.mxu2 }
 0x1f5   :  { %v570_v36 = vpop.f32.mrf.mxu1 }
 0x1f6   :  { %v571_v37 = vadd.f32 %v1051_v34, %v570_v36 }
 0x1f8   :  { %v579_v38 = vsel %vm240_vm1, %v571_v37, 0.0 }
 0x1f9   :  { %580 = vadd.xlane.f32.xlu2 %v579_v38 }
 0x1fd   :  { %v572_v39 = vpop.f32.mrf.mxu1 }
 0x1fe   :  { %v573_v40 = vadd.f32 %v1051_v34, %v572_v39 }
 0x200   :  { %v582_v41 = vsel %vm240_vm1, %v573_v40, 0.0 }
 0x201   :  { %583 = vadd.xlane.f32.xlu2 %v582_v41 }
 0x205   :  { %v575_v42 = vpop.f32.mrf.mxu1 }
 0x206   :  { %v576_v43 = vadd.f32 %v1051_v34, %v575_v42 }
 0x208   :  { %v585_v44 = vsel %vm240_vm1, %v576_v43, 0.0 }
 0x209   :  { %586 = vadd.xlane.f32.xlu1 %v585_v44  ;;  %v1052_v44 = vld [vmem:[%s1416_s3] ss:$0 sm:$0xff] }
 0x20d   :  { %v577_v45 = vpop.f32.mrf.mxu1 }
 0x26c   :  { %v581_v53 = vpop.xlane.xlu2 %580 }
 0x26d   :  { %v588_v54 = vmul.f32 %v581_v53, %v1342_v52 }
 0x26f   :  { %v1345_v55 = vsub.f32 %v571_v37, %v588_v54 }
 0x271   :  { %v594_v56 = vmul.f32 %v1345_v55, %v1345_v55 }
 0x273   :  { %v597_v57 = vsel %vm240_vm1, %v594_v56, 0.0 }
 0x274   :  { %598 = vadd.xlane.f32.xlu2 %v597_v57  ;;  %v584_v58 = vpop.xlane.xlu2 %583 }
 0x275   :  { %v589_v59 = vmul.f32 %v584_v58, %v1342_v52 }
 0x277   :  { %v592_v60 = vsub.f32 %v573_v40, %v589_v59 }
 0x279   :  { %v595_v61 = vmul.f32 %v592_v60, %v592_v60 }
 0x27b   :  { %v600_v63 = vsel %vm240_vm1, %v595_v61, 0.0  ;;  %v1001_v61 = vld [vmem:[%s1418_s14 + $0x18] sm:$0xff] }
 0x27c   :  { %601 = vadd.xlane.f32.xlu2 %v600_v63  ;;  %v587_v0 = vpop.xlane.xlu1 %586  ;;  %732 = vmatpush.bf16.msrb.mxu3 %v1001_v61 }
 0x27d   :  { %v590_v1 = vmul.f32 %v587_v0, %v1342_v52  ;;  %v1000_v0 = vld [vmem:[%s1418_s14 + $0x10] sm:$0xff] }
 0x27f   :  { %v593_v3 = vsub.f32 %v576_v43, %v590_v1 }
 0x280   :  { %733 = vmatpush.bf16.msrb.mxu3 %v1000_v0 }
 0x281   :  { %v596_v4 = vmul.f32 %v593_v3, %v593_v3 }
 0x283   :  { %v603_v6 = vsel %vm240_vm1, %v596_v4, 0.0 }
 0x284   :  { %430 = vadd.xlane.f32.xlu2 %v429_v5  ;;  %604 = vadd.xlane.f32.xlu0 %v603_v6 }
 0x2e7   :  { %v599_v7 = vpop.xlane.xlu2 %598 }
 0x2e8   :  { %v606_v8 = vmul.f32 %v599_v7, %v1342_v52 }
 0x2ea   :  { %v609_v9 = vadd.f32 1e-05, %v606_v8 }
 0x2ec   :  { %1062 = vrsqrt.f32 %v609_v9  ;;  %vm618_vm10 = vweird.f32 %v609_v9 }
 0x2ef   :  { %v602_v10 = vpop.xlane.xlu2 %601 }
 0x2f0   :  { %v607_v11 = vmul.f32 %v602_v10, %v1342_v52 }
 0x2f2   :  { %v610_v12 = vadd.f32 1e-05, %v607_v11  ;;  %v1063_v13 = vpop.eup %1062 }
 0x2f3   :  { %v613_v14 = vmul.f32 %v1063_v13, %v609_v9  ;;  %vm619_vm7 = vweird.f32 %v1063_v13  ;;  %v1054_v9 = vld [vmem:[%s1419_s19] ss:$0 sm:$0xff] }
 0x2f4   :  { %1064 = vrsqrt.f32 %v610_v12  ;;  %vm628_vm8 = vweird.f32 %v610_v12  ;;  %vm620_vm11 = vmor %vm618_vm10, %vm619_vm7  ;;  %vm812_vm7 = vcmask 60416  }
 0x2f5   :  { %v614_v20 = vmul.f32 %v1063_v13, %v613_v14 }
 0x2f7   :  { %v431_v15 = vpop.xlane.xlu2 %430  ;;  %v605_v16 = vpop.xlane.xlu0 %604  ;;  %v615_v26 = vmul.f32 0.5, %v614_v20 }
 0x2f8   :  { %v439_v17 = vmul.f32 %v1342_v52, %v431_v15  ;;  %v608_v18 = vmul.f32 %v605_v16, %v1342_v52 }
 0x2f9   :  { %v616_v31 = vsub.f32 1.5, %v615_v26 }
 0x2fa   :  { %v1065_v19 = vpop.eup %1064  ;;  %v1360_v21 = vsub.f32 %v426_v2, %v439_v17  ;;  %v611_v22 = vadd.f32 1e-05, %v608_v18  ;;  %v999_v2 = vld [vmem:[%s1418_s14 + $0x8] sm:$0xff]  ;;  %v998_v17 = vld [vmem:[%s1418_s14] sm:$0xff] }
 0x2fb   :  { %v623_v23 = vmul.f32 %v1065_v19, %v610_v12  ;;  %vm629_vm6 = vweird.f32 %v1065_v19  ;;  %v617_v35 = vmul.f32 %v1063_v13, %v616_v31  ;;  %734 = vmatpush.bf16.msrb.mxu3 %v999_v2  ;;  %v1055_v12 = vld [vmem:[%s1420_s24] ss:$0 sm:$0xff] }
 0x2fc   :  { %1066 = vrsqrt.f32 %v611_v22  ;;  %v441_v24 = vmul.f32 %v1360_v21, %v1360_v21  ;;  %vm630_vm9 = vmor %vm628_vm8, %vm629_vm6  ;;  %vm638_vm13 = vweird.f32 %v611_v22 }
 0x2fd   :  { %v624_v25 = vmul.f32 %v1065_v19, %v623_v23  ;;  %v621_v39 = vsel %vm620_vm11, %v1063_v13, %v617_v35 }
 0x2fe   :  { %v442_v27 = vsel %vm240_vm1, %v441_v24, 0.0  ;;  %v642_v42 = vmul.f32 %v621_v39, %v1345_v55 }
 0x2ff   :  { %v625_v28 = vmul.f32 0.5, %v624_v25  ;;  %443 = vadd.xlane.f32.xlu2 %v442_v27  ;;  %735 = vmatpush.bf16.msrb.mxu3 %v998_v17 }
 0x300   :  { %v649_v49 = vmul.f32 %v1052_v44, %v642_v42 }
 0x301   :  { %v626_v29 = vsub.f32 1.5, %v625_v28 }
 0x302   :  { %v1067_v30 = vpop.eup %1066  ;;  %v656_v54 = vadd.f32 %v1053_v48, %v649_v49 }
 0x303   :  { %v633_v32 = vmul.f32 %v1067_v30, %v611_v22  ;;  %v627_v33 = vmul.f32 %v1065_v19, %v626_v29  ;;  %vm639_vm12 = vweird.f32 %v1067_v30 }
 0x304   :  { %vm640_vm14 = vmor %vm638_vm13, %vm639_vm12  ;;  %v659_v55 = vmax.f32 %v656_v54, 0.0 }
 0x305   :  { %v634_v34 = vmul.f32 %v1067_v30, %v633_v32  ;;  %v631_v37 = vsel %vm630_vm9, %v1065_v19, %v627_v33  ;;  %v1003_v32 = vld [vmem:[%s1273_s20 + $0x8] sm:$0xff]  ;;  %v1002_v33 = vld [vmem:[%s1273_s20] sm:$0xff]  ;;  %s821_s20 = sshll.u32 %s1283_s4, 4  ;;  %s822_s20 = int_to_ptr.hbm [resolvable:$true] %s821_s20 }
 0x306   :  { %v643_v40 = vmul.f32 %v631_v37, %v592_v60  ;;  %v333_v60 = vld [vmem:[%s1168_s29] sm:$0xf]  ;;  %s1421_s29 = sld [smem:[#allocation15_spill]]  ;;  %s1084_s7 = sshra.s32 %s822_s20, 4  ;;  %s1085_s7 = int_to_ptr.hbm [resolvable:$true] %s1084_s7 }
 0x307   :  { %v635_v36 = vmul.f32 0.5, %v634_v34  ;;  %p1089_p1 = scmp.lt.s32.totalorder %s1085_s7, %s1283_s4 }
 0x308   :  { %v650_v46 = vmul.f32 %v1052_v44, %v643_v40 }
 0x309   :  { %v636_v38 = vsub.f32 1.5, %v635_v36 }
 0x30a   :  { %v657_v51 = vadd.f32 %v1053_v48, %v650_v46  ;;  %v1058_v46 = vld [vmem:[%s1268_s25] ss:$0 sm:$0xff]  ;;  %s1086_s25 = scalar_lea.hbm %s1085_s7, 4 }
 0x30b   :  { %v637_v41 = vmul.f32 %v1067_v30, %v636_v38  ;;  %p1087_p0 = scmp.ne.s32.totalorder %s1085_s7, %s1086_s25  ;;  %p1090_p2 = scmp.lt.s32.totalorder %s1088_s10, %s1086_s25 }
 0x30c   :  { %v660_v57 = vmax.f32 %v657_v51, 0.0  ;;  %v1056_v23 = vld [vmem:[%s1421_s29] ss:$0 sm:$0xff] }
 0x30d   :  { %v641_v43 = vsel %vm640_vm14, %v1067_v30, %v637_v41  ;;  %p1091_p3 = por %p1090_p2, %p1089_p1 }
 0x30e   :  { %v644_v45 = vmul.f32 %v641_v43, %v593_v3  ;;  %v662_v59 = vpack.c.bf16 %v660_v57, %v659_v55  ;;  %v1057_v43 = vld [vmem:[%s1422_s30] ss:$0 sm:$0xff] }
 0x30f   :  { %p1092_p4 = pnand %p1091_p3, %p1087_p0 }
 0x310   :  { %v651_v47 = vmul.f32 %v1052_v44, %v644_v45 }
 0x312   :  { %v658_v50 = vadd.f32 %v1053_v48, %v651_v47 }
 0x314   :  { %v661_v53 = vmax.f32 %v658_v50, 0.0  ;;  %v1059_v50 = vld [vmem:[%s1278_s27] ss:$0 sm:$0xff] }
 0x316   :  { %v663_v56 = vpack.c.bf16 %v661_v53, %v661_v53 }
 0x318   :  { %v668_v58 = vsel %vm195_vm0, %v663_v56, 0 }
 0x319   :  { %676 = vmatpush.bf16.msra.mxu2 %v668_v58 }
 0x31d   :  { %677 = vmatpush.bf16.msra.mxu2 %v662_v59 }
 0x320   :  { %951 = vmatmul.msk.bf16.vlgmr.msra.gmra.mxu2 %vm188_vm3, %v333_v60  ;;  %vm741_vm3 = vcmask 257024  }
 0x321   :  { %805 = vmatpush.bf16.msrb.mxu2 %v1003_v32 }
 0x325   :  { %806 = vmatpush.bf16.msrb.mxu2 %v1002_v33 }
 0x372   :  { %v444_v62 = vpop.xlane.xlu2 %443 }
 0x373   :  { %v445_v63 = vmul.f32 %v444_v62, %v1342_v52 }
 0x375   :  { %v446_v1 = vadd.f32 1e-05, %v445_v63 }
 0x377   :  { %1068 = vrsqrt.f32 %v446_v1  ;;  %vm453_vm0 = vweird.f32 %v446_v1 }
 0x37d   :  { %v1069_v3 = vpop.eup %1068 }
 0x37e   :  { %v448_v4 = vmul.f32 %v1069_v3, %v446_v1  ;;  %vm454_vm15 = vweird.f32 %v1069_v3 }
 0x37f   :  { %vm455_vm2 = vmor %vm453_vm0, %vm454_vm15 }
 0x380   :  { %v449_v5 = vmul.f32 %v1069_v3, %v448_v4 }
 0x382   :  { %v450_v6 = vmul.f32 0.5, %v449_v5 }
 0x384   :  { %v451_v7 = vsub.f32 1.5, %v450_v6 }
 0x386   :  { %v452_v8 = vmul.f32 %v1069_v3, %v451_v7 }
 0x388   :  { %v456_v10 = vsel %vm455_vm2, %v1069_v3, %v452_v8 }
 0x389   :  { %v457_v11 = vmul.f32 %v456_v10, %v1360_v21 }
 0x38b   :  { %v462_v13 = vmul.f32 %v1054_v9, %v457_v11 }
 0x38d   :  { %v467_v14 = vadd.f32 %v1055_v12, %v462_v13 }
 0x38f   :  { %v468_v15 = vmax.f32 %v467_v14, 0.0 }
 0x391   :  { %684 = vrot.lane.b32.xlu2 %v468_v15, %s1127_s0 }
 0x3a3   :  { %v679_v16 = vpop.f32.mrf.mxu2 }
 0x3ab   :  { %v681_v18 = vpop.f32.mrf.mxu2 }
 0x3eb   :  { %v685_v19 = vpop.permute.xlu2 %684 }
 0x3ec   :  { %v687_v20 = vsel %vm240_vm1, %v679_v16, %v685_v19 }
 0x3ed   :  { %v696_v22 = vpack.c.bf16 %v687_v20, %v687_v20 }
 0x3ef   :  { %968 = vmatmul.msk.bf16.vlgmr.msrb.gmra.mxu3 %vm412_vm4, %v696_v22 }
 0x472   :  { %v737_v21 = vpop.f32.mrf.mxu3 }
 0x473   :  { %v738_v24 = vadd.f32 %v1056_v23, %v737_v21 }
 0x475   :  { %v742_v25 = vsel %vm741_vm3, %v738_v24, 0.0 }
 0x476   :  { %743 = vadd.xlane.f32.xlu1 %v742_v25 }
 0x47a   :  { %v739_v26 = vpop.f32.mrf.mxu3 }
 0x4e9   :  { %v744_v27 = vpop.xlane.xlu1 %743 }
 0x4ea   :  { %v745_v28 = vmul.f32 %v744_v27, %v1342_v52 }
 0x4ec   :  { %v746_v29 = vsub.f32 %v738_v24, %v745_v28 }
 0x4ee   :  { %v747_v30 = vmul.f32 %v746_v29, %v746_v29 }
 0x4f0   :  { %v748_v31 = vsel %vm741_vm3, %v747_v30, 0.0 }
 0x4f1   :  { %749 = vadd.xlane.f32.xlu0 %v748_v31 }
 0x564   :  { %v750_v34 = vpop.xlane.xlu0 %749 }
 0x565   :  { %v751_v35 = vmul.f32 %v750_v34, %v1342_v52 }
 0x567   :  { %v752_v36 = vadd.f32 1e-05, %v751_v35 }
 0x569   :  { %1070 = vrsqrt.f32 %v752_v36  ;;  %vm759_vm5 = vweird.f32 %v752_v36 }
 0x56f   :  { %v1071_v37 = vpop.eup %1070 }
 0x570   :  { %v754_v38 = vmul.f32 %v1071_v37, %v752_v36  ;;  %vm760_vm4 = vweird.f32 %v1071_v37 }
 0x571   :  { %vm761_vm6 = vmor %vm759_vm5, %vm760_vm4 }
 0x572   :  { %v755_v39 = vmul.f32 %v1071_v37, %v754_v38 }
 0x574   :  { %v756_v40 = vmul.f32 0.5, %v755_v39 }
 0x576   :  { %v757_v41 = vsub.f32 1.5, %v756_v40 }
 0x578   :  { %v758_v42 = vmul.f32 %v1071_v37, %v757_v41 }
 0x57a   :  { %v762_v44 = vsel %vm761_vm6, %v1071_v37, %v758_v42 }
 0x57b   :  { %v763_v45 = vmul.f32 %v762_v44, %v746_v29 }
 0x57d   :  { %v768_v47 = vmul.f32 %v1057_v43, %v763_v45 }
 0x57f   :  { %v773_v48 = vadd.f32 %v1058_v46, %v768_v47 }
 0x581   :  { %v774_v52 = vmax.f32 %v773_v48, 0.0 }
 0x583   :  { %v779_v49 = vpack.c.bf16 %v774_v52, %v774_v52 }
 0x585   :  { %977 = vmatmul.msk.bf16.vlgmr.msrb.gmra.mxu2 %vm240_vm1, %v779_v49 }
 0x608   :  { %v808_v51 = vpop.f32.mrf.mxu2 }
 0x609   :  { %v809_v53 = vadd.f32 %v1059_v50, %v808_v51 }
 0x60b   :  { %813 = vst.msk [vmem:[#allocation2] sm:$0xf] %vm812_vm7, %v809_v53 }
 0x60c   :  { %1095 = shalt.err (!%p1092_p4)
}
 0x60d   :  { %824 = dma.vmem_to_hbm [thread:$0]  %s820_s12, 64, %s822_s20, [#allocation3]  }
 0x610   :  { %v810_v54 = vpop.f32.mrf.mxu2 }
 0x611   :  { %1096 = dma.done.wait [#allocation3], 64  }
 0x612   :  { %1097 = vsyncadd [#allocation3], 4294967232 }
 0x613   :  { %829 = vsyncpa [#allocation3], 1 }

</bundles_post_ra>
